<compile_context>
chip_gen: v5e
topology: v5e:2x2
jax: 0.10.0
libtpu: 0.0.40
codegen_flags: <defaults>
</compile_context>

<pallas_src>
import functools

import jax
import jax.numpy as jnp
from jax.experimental import pallas as pl
from jax.experimental.pallas import tpu as pltpu


# ---------------------------------------------------------------------------
# fused kernel: one batch image per grid step
# ---------------------------------------------------------------------------
def _strip_att_kernel(x_ref, wfold_ref, esel_ref, taps_ref, o_ref):
    s_len, oc = x_ref.shape                      # (strip length, OTHER*C)
    k = taps_ref.shape[0] // s_len               # number of taps

    xb = x_ref[...]                              # (S, OC) f32

    # Global average pool + 1x1 conv, fused: wfold is the conv weight tiled
    # over the OTHER axis and pre-scaled by 1/(H*W), so a sublane sum followed
    # by one tiny matmul yields the conv logits directly.
    v = jnp.sum(xb, axis=0, keepdims=True)                                        # (1, OC)
    logits = jnp.dot(v, wfold_ref[...], preferred_element_type=jnp.float32)       # (1, G*K)
    filt = 1.0 / (1.0 + jnp.exp(-logits))        # sigmoid (exp/recip hit the EUP slot)

    # Expand the (group, tap) filter to per-lane weights, one OC-wide slab per
    # tap, via a 0/1 selection matmul (pure gather -> sigmoid commutes).
    sexp = jnp.dot(filt, esel_ref[...], preferred_element_type=jnp.float32)       # (1, K*OC)

    # All K reflect/dilation-2 taps in a single MXU matmul: row t*S + j of the
    # 0/1 matrix selects xb[reflect(j + 2t - (k-1))].
    taps = jnp.dot(taps_ref[...], xb, preferred_element_type=jnp.float32)         # (K*S, OC)

    acc = taps[0:s_len, :] * sexp[:, 0:oc]
    for t in range(1, k):                        # k is small & static -> unrolled
        acc = acc + taps[t * s_len:(t + 1) * s_len, :] * sexp[:, t * oc:(t + 1) * oc]
    o_ref[...] = acc                             # (16, 512) -> unmasked full-lane stores


# ---------------------------------------------------------------------------
# wrapper: NCHW in / NCHW out, host-side constant folding + layout plumbing
# ---------------------------------------------------------------------------
def spatial_strip_att_global(x, wconv, *, kernel=5, group=2, horizontal=True):
    """x: (B, C, H, W) float32; wconv: (group*kernel, C) 1x1-conv weight (no bias)."""
    B, C, H, W = x.shape
    K = kernel
    GK = group * K
    assert C % group == 0, "dim must be divisible by group"
    assert wconv.shape == (GK, C)
    cg = C // group

    if horizontal:
        S, OTH = W, H
        x2 = jnp.transpose(x, (0, 3, 2, 1)).reshape(B, S, OTH * C)   # (B, W, H*C)
    else:
        S, OTH = H, W
        x2 = jnp.transpose(x, (0, 2, 3, 1)).reshape(B, S, OTH * C)   # (B, H, W*C)
    assert S >= K, "ReflectionPad2d needs strip length >= kernel"
    OC = OTH * C

    # --- host-side constants (folded weights; traced once under jit) --------
    # (OC, G*K): conv weight tiled over OTHER and pre-scaled by 1/(H*W).
    wfold = jnp.tile(wconv.T, (OTH, 1)) * (1.0 / float(H * W))

    # (G*K, K*OC): 0/1 selection matrix expanding filt[g, t] to lane o*C + c
    # of tap slab t whenever channel c belongs to group g.
    row = jnp.arange(GK)
    g_row, t_row = row // K, row % K
    col = jnp.arange(K * OC)
    t_col = col // OC
    g_col = ((col % OC) % C) // cg
    esel = ((t_row[:, None] == t_col[None, :]) &
            (g_row[:, None] == g_col[None, :])).astype(jnp.float32)

    # (K*S, S): 0/1 reflect + dilation-2 tap matrix.
    tt = jnp.arange(K)[:, None]
    jj = jnp.arange(S)[None, :]
    q = jj + 2 * tt - (K - 1)                                        # padded-tap position
    src = jnp.where(q < 0, -q, jnp.where(q >= S, 2 * (S - 1) - q, q))  # reflection index
    tapmat = (src[:, :, None] == jnp.arange(S)[None, None, :]).astype(jnp.float32)
    tapmat = tapmat.reshape(K * S, S)

    out2 = pl.pallas_call(
        _strip_att_kernel,
        out_shape=jax.ShapeDtypeStruct((B, S, OC), jnp.float32),
        grid=(B,),
        in_specs=[
            pl.BlockSpec((None, S, OC), lambda i: (i, 0, 0)),
            pl.BlockSpec((OC, GK), lambda i: (0, 0)),
            pl.BlockSpec((GK, K * OC), lambda i: (0, 0)),
            pl.BlockSpec((K * S, S), lambda i: (0, 0)),
        ],
        out_specs=pl.BlockSpec((None, S, OC), lambda i: (i, 0, 0)),
        compiler_params=pltpu.CompilerParams(dimension_semantics=("parallel",)),
    )(x2, wfold, esel, tapmat)

    out4 = out2.reshape(B, S, OTH, C)
    if horizontal:
        return jnp.transpose(out4, (0, 3, 2, 1))   # (B, C, H, W)
    return jnp.transpose(out4, (0, 3, 1, 2))       # (B, C, H, W)


# ---------------------------------------------------------------------------
# pure-JAX reference (mirrors the PyTorch forward) for a correctness check
# ---------------------------------------------------------------------------
def spatial_strip_att_global_ref(x, wconv, kernel, group, horizontal=True):
    B, C, H, W = x.shape
    k = kernel
    cg = C // group
    gap = jnp.mean(x, axis=(2, 3))                                   # (B, C)
    filt = 1.0 / (1.0 + jnp.exp(-(gap @ wconv.T)))                   # (B, group*k)
    scale = jnp.repeat(filt.reshape(B, group, k), cg, axis=1)        # (B, C, k)
    pad = k - 1
    if horizontal:
        xpad = jnp.pad(x, ((0, 0), (0, 0), (0, 0), (pad, pad)), mode="reflect")
        return sum(xpad[:, :, :, 2 * t:2 * t + W] * scale[:, :, t][:, :, None, None]
                   for t in range(k))
    xpad = jnp.pad(x, ((0, 0), (0, 0), (pad, pad), (0, 0)), mode="reflect")
    return sum(xpad[:, :, 2 * t:2 * t + H, :] * scale[:, :, t][:, :, None, None]
               for t in range(k))


if __name__ == "__main__":
    key = jax.random.PRNGKey(0)
    kx, kw = jax.random.split(key)
    B, C, H, W = 2, 32, 16, 16          # PyTorch input (2, 32, 16, 16) NCHW, dim=32
    kernel, group = 5, 2                # module defaults

    x = jax.random.normal(kx, (B, C, H, W), jnp.float32)
    wconv = jax.random.normal(kw, (group * kernel, C), jnp.float32) * 2.0

    # H=True (strip along W)
    fwd_h = jax.jit(functools.partial(spatial_strip_att_global,
                                      kernel=kernel, group=group, horizontal=True))
    out_h = jax.block_until_ready(fwd_h(x, wconv))
    ref_h = spatial_strip_att_global_ref(x, wconv, kernel, group, horizontal=True)

    # H=False (strip along H)
    fwd_v = jax.jit(functools.partial(spatial_strip_att_global,
                                      kernel=kernel, group=group, horizontal=False))
    out_v = jax.block_until_ready(fwd_v(x, wconv))
    ref_v = spatial_strip_att_global_ref(x, wconv, kernel, group, horizontal=False)

    assert out_h.shape == (B, C, H, W), out_h.shape
    assert out_v.shape == (B, C, H, W), out_v.shape
    assert bool(jnp.all(jnp.isfinite(out_h))) and bool(jnp.all(jnp.isfinite(out_v)))
    assert float(jnp.max(jnp.abs(out_h - ref_h))) < 5e-2
    assert float(jnp.max(jnp.abs(out_v - ref_v))) < 5e-2
    print("KERNEL_OK")
</pallas_src>

<mosaic_0001>
module attributes {stable_mosaic.version = 11 : i64} {
  func.func @_strip_att_kernel(%arg0: i32, %arg1: memref<1x16x512xf32, #tpu.memory_space<vmem>>, %arg2: memref<512x10xf32, #tpu.memory_space<vmem>>, %arg3: memref<10x2560xf32, #tpu.memory_space<vmem>>, %arg4: memref<80x16xf32, #tpu.memory_space<vmem>>, %arg5: memref<1x16x512xf32, #tpu.memory_space<vmem>>) attributes {dimension_semantics = [#tpu.dimension_semantics<parallel>], iteration_bounds = array<i64: 2>, scalar_prefetch = 0 : i64, scratch_operands = 0 : i64, tpu.core_type = #tpu.core_type<tc>, window_params = [{transform_indices = @transform_0, window_bounds = array<i64: 1, 16, 512>}, {pipeline_mode = #tpu.pipeline_mode<synchronous>, transform_indices = @transform_1, window_bounds = array<i64: 512, 10>}, {pipeline_mode = #tpu.pipeline_mode<synchronous>, transform_indices = @transform_2, window_bounds = array<i64: 10, 2560>}, {pipeline_mode = #tpu.pipeline_mode<synchronous>, transform_indices = @transform_3, window_bounds = array<i64: 80, 16>}, {transform_indices = @transform_4, window_bounds = array<i64: 1, 16, 512>}]} {
    %c0 = arith.constant 0 : index
    %c0_0 = arith.constant 0 : index
    %c0_1 = arith.constant 0 : index
    %0 = vector.load %arg1[%c0, %c0_0, %c0_1] : memref<1x16x512xf32, #tpu.memory_space<vmem>>, vector<1x16x512xf32>
    %1 = vector.shape_cast %0 : vector<1x16x512xf32> to vector<16x512xf32>
    %cst = arith.constant dense<0.000000e+00> : vector<512xf32>
    %2 = vector.multi_reduction <add>, %1, %cst [0] : vector<16x512xf32> to vector<512xf32>
    %3 = vector.shape_cast %2 : vector<512xf32> to vector<1x512xf32>
    %c0_2 = arith.constant 0 : index
    %c0_3 = arith.constant 0 : index
    %4 = vector.load %arg2[%c0_2, %c0_3] : memref<512x10xf32, #tpu.memory_space<vmem>>, vector<512x10xf32>
    %cst_4 = arith.constant dense<0.000000e+00> : vector<1x10xf32>
    %5 = tpu.matmul %3, %4, %cst_4 {dimension_numbers = #tpu.dot_dimension_numbers<[1], [0], [0], [1], [0, 0, 1, 1], [], []>} : vector<1x512xf32>, vector<512x10xf32>, vector<1x10xf32> -> vector<1x10xf32>
    %cst_5 = arith.constant 0.000000e+00 : f32
    %6 = vector.broadcast %cst_5 : f32 to vector<1x10xf32>
    %7 = arith.subf %6, %5 : vector<1x10xf32>
    %8 = math.exp %7 : vector<1x10xf32>
    %cst_6 = arith.constant 1.000000e+00 : f32
    %9 = vector.broadcast %cst_6 : f32 to vector<1x10xf32>
    %10 = arith.addf %9, %8 : vector<1x10xf32>
    %cst_7 = arith.constant 1.000000e+00 : f32
    %11 = vector.broadcast %cst_7 : f32 to vector<1x10xf32>
    %12 = arith.divf %11, %10 : vector<1x10xf32>
    %c0_8 = arith.constant 0 : index
    %c0_9 = arith.constant 0 : index
    %13 = vector.load %arg3[%c0_8, %c0_9] : memref<10x2560xf32, #tpu.memory_space<vmem>>, vector<10x2560xf32>
    %cst_10 = arith.constant dense<0.000000e+00> : vector<1x2560xf32>
    %14 = tpu.matmul %12, %13, %cst_10 {dimension_numbers = #tpu.dot_dimension_numbers<[1], [0], [0], [1], [0, 0, 1, 1], [], []>} : vector<1x10xf32>, vector<10x2560xf32>, vector<1x2560xf32> -> vector<1x2560xf32>
    %c0_11 = arith.constant 0 : index
    %c0_12 = arith.constant 0 : index
    %15 = vector.load %arg4[%c0_11, %c0_12] : memref<80x16xf32, #tpu.memory_space<vmem>>, vector<80x16xf32>
    %cst_13 = arith.constant dense<0.000000e+00> : vector<80x512xf32>
    %16 = tpu.matmul %15, %1, %cst_13 {dimension_numbers = #tpu.dot_dimension_numbers<[1], [0], [0], [1], [0, 0, 1, 1], [], []>} : vector<80x16xf32>, vector<16x512xf32>, vector<80x512xf32> -> vector<80x512xf32>
    %17 = vector.extract_strided_slice %16 {offsets = [0, 0], sizes = [16, 512], strides = [1, 1]} : vector<80x512xf32> to vector<16x512xf32>
    %18 = vector.extract_strided_slice %14 {offsets = [0, 0], sizes = [1, 512], strides = [1, 1]} : vector<1x2560xf32> to vector<1x512xf32>
    %19 = vector.broadcast %18 : vector<1x512xf32> to vector<16x512xf32>
    %20 = arith.mulf %17, %19 : vector<16x512xf32>
    %21 = vector.extract_strided_slice %16 {offsets = [16, 0], sizes = [16, 512], strides = [1, 1]} : vector<80x512xf32> to vector<16x512xf32>
    %22 = vector.extract_strided_slice %14 {offsets = [0, 512], sizes = [1, 512], strides = [1, 1]} : vector<1x2560xf32> to vector<1x512xf32>
    %23 = vector.broadcast %22 : vector<1x512xf32> to vector<16x512xf32>
    %24 = arith.mulf %21, %23 : vector<16x512xf32>
    %25 = arith.addf %20, %24 : vector<16x512xf32>
    %26 = vector.extract_strided_slice %16 {offsets = [32, 0], sizes = [16, 512], strides = [1, 1]} : vector<80x512xf32> to vector<16x512xf32>
    %27 = vector.extract_strided_slice %14 {offsets = [0, 1024], sizes = [1, 512], strides = [1, 1]} : vector<1x2560xf32> to vector<1x512xf32>
    %28 = vector.broadcast %27 : vector<1x512xf32> to vector<16x512xf32>
    %29 = arith.mulf %26, %28 : vector<16x512xf32>
    %30 = arith.addf %25, %29 : vector<16x512xf32>
    %31 = vector.extract_strided_slice %16 {offsets = [48, 0], sizes = [16, 512], strides = [1, 1]} : vector<80x512xf32> to vector<16x512xf32>
    %32 = vector.extract_strided_slice %14 {offsets = [0, 1536], sizes = [1, 512], strides = [1, 1]} : vector<1x2560xf32> to vector<1x512xf32>
    %33 = vector.broadcast %32 : vector<1x512xf32> to vector<16x512xf32>
    %34 = arith.mulf %31, %33 : vector<16x512xf32>
    %35 = arith.addf %30, %34 : vector<16x512xf32>
    %36 = vector.extract_strided_slice %16 {offsets = [64, 0], sizes = [16, 512], strides = [1, 1]} : vector<80x512xf32> to vector<16x512xf32>
    %37 = vector.extract_strided_slice %14 {offsets = [0, 2048], sizes = [1, 512], strides = [1, 1]} : vector<1x2560xf32> to vector<1x512xf32>
    %38 = vector.broadcast %37 : vector<1x512xf32> to vector<16x512xf32>
    %39 = arith.mulf %36, %38 : vector<16x512xf32>
    %40 = arith.addf %35, %39 : vector<16x512xf32>
    %c0_14 = arith.constant 0 : index
    %c0_15 = arith.constant 0 : index
    %c0_16 = arith.constant 0 : index
    %41 = vector.load %arg5[%c0_14, %c0_15, %c0_16] : memref<1x16x512xf32, #tpu.memory_space<vmem>>, vector<1x16x512xf32>
    %42 = vector.shape_cast %41 : vector<1x16x512xf32> to vector<16x512xf32>
    %43 = vector.shape_cast %40 : vector<16x512xf32> to vector<1x16x512xf32>
    tpu.vector_store %arg5[%c0_14, %c0_15, %c0_16], %43 {strides = array<i32>} : memref<1x16x512xf32, #tpu.memory_space<vmem>>, vector<1x16x512xf32>,
    return
  }
  func.func @transform_0(%arg0: i32) -> (i32, i32, i32) {
    %c0_i32 = arith.constant 0 : i32
    %c0_i32_0 = arith.constant 0 : i32
    %c0_i32_1 = arith.constant 0 : i32
    return %arg0, %c0_i32, %c0_i32_0 : i32, i32, i32
  }
  func.func @transform_1(%arg0: i32) -> (i32, i32) {
    %c0_i32 = arith.constant 0 : i32
    %c0_i32_0 = arith.constant 0 : i32
    %c0_i32_1 = arith.constant 0 : i32
    return %c0_i32, %c0_i32_0 : i32, i32
  }
  func.func @transform_2(%arg0: i32) -> (i32, i32) {
    %c0_i32 = arith.constant 0 : i32
    %c0_i32_0 = arith.constant 0 : i32
    %c0_i32_1 = arith.constant 0 : i32
    return %c0_i32, %c0_i32_0 : i32, i32
  }
  func.func @transform_3(%arg0: i32) -> (i32, i32) {
    %c0_i32 = arith.constant 0 : i32
    %c0_i32_0 = arith.constant 0 : i32
    %c0_i32_1 = arith.constant 0 : i32
    return %c0_i32, %c0_i32_0 : i32, i32
  }
  func.func @transform_4(%arg0: i32) -> (i32, i32, i32) {
    %c0_i32 = arith.constant 0 : i32
    %c0_i32_0 = arith.constant 0 : i32
    %c0_i32_1 = arith.constant 0 : i32
    return %arg0, %c0_i32, %c0_i32_0 : i32, i32, i32
  }
}

</mosaic_0001>

<bundles_post_ra>
// kernel: spatial_strip_att_global.1
= control target key start
LH: loop header
LB: loop body
LE: loop exit
PB: predicated region body
PF: predicated region fallthrough
CT: control target
= control target key end

     0   :  { %s1424_s15 = smov 0   ;;  %s1986_s0 = inlined_call_operand.vmem [shape: f32[2,16,512], index: 0, kind: input, shape index: {}]   ;;  %s1987_s1 = inlined_call_operand.vmem [shape: f32[512,10], index: 1, kind: input, shape index: {}]   ;;  %s1988_s2 = inlined_call_operand.vmem [shape: f32[10,2560], index: 2, kind: input, shape index: {}]   ;;  %s1989_s3 = inlined_call_operand.vmem [shape: f32[80,16], index: 3, kind: input, shape index: {}]   ;;  %s1990_s4 = inlined_call_operand.vmem [shape: f32[2,16,512], index: 4, kind: output, shape index: {}]  }
   0x1 LB: > { %s1286_s16 = sadd.s32 4294967295, %s1397_s15   ;;  %p1290_p0 = scmp.ge.s32.totalorder %s1397_s15, 1  ;;  %s1397_s15 = sphi %s1424_s15, %s14_s15  }
   0x2   : > { %p162_p1 = scmp.lt.s32.totalorder %s1397_s15, 3 }
   0x4   : > { %p163_p2 = pnand %p1290_p0, %p162_p1 }
   0x5   : > { %p1482_p3 = scmp.lt.s32.totalorder (!%p163_p2), %s1286_s16, 1 }
   0x6   : > { %166 = sbr.rel (%p163_p2) target bundleno = 461 (0x1cd), region = 36 }
   0xb   : > { %v281_v0 = vld [vmem:[%s1987_s1 + $0x178] sm:$0xff]  ;;  %v280_v1 = vld [vmem:[%s1987_s1 + $0x170] sm:$0xff]  ;;  %v279_v5 = vld [vmem:[%s1987_s1 + $0x168] sm:$0xff]  ;;  %s1993_s16 = smov (!%p1482_p3, %s1286_s16), 1  ;;  %vm441_vm0 = vcmask 1041408   ;;  %vm437_vm4 = vcmask 80896  }
   0xc   : > { %v297_v2 = vld [vmem:[%s1987_s1 + $0x1f8] sm:$0xff]  ;;  %338 = vmatpush.msra.mxu2 %v281_v0  ;;  %v296_v6 = vld [vmem:[%s1987_s1 + $0x1f0] sm:$0xff]  ;;  %v295_v9 = vld [vmem:[%s1987_s1 + $0x1e8] sm:$0xff]  ;;  %s1377_s8 = sshll.u32 %s1993_s16, 6  ;;  %vm912_vm6 = vcmask 130048  }
   0xd   : > { %358 = vmatpush.msra.mxu3 %v297_v2  ;;  %v249_v3 = vld [vmem:[%s1987_s1 + $0x78] sm:$0xff]  ;;  %v248_v7 = vld [vmem:[%s1987_s1 + $0x70] sm:$0xff]  ;;  %v247_v10 = vld [vmem:[%s1987_s1 + $0x68] sm:$0xff]  ;;  %s1564_s25 = scalar_lea.vmem %s1986_s0, %s1377_s8  ;;  %s197_s19 = scalar_lea.vmem %s1990_s4, %s1377_s8 }
   0xe   : > { %v265_v4 = vld [vmem:[%s1987_s1 + $0xf8] sm:$0xff]  ;;  %298 = vmatpush.msra.mxu0 %v249_v3  ;;  %v264_v8 = vld [vmem:[%s1987_s1 + $0xf0] sm:$0xff]  ;;  %339 = vmatpush.msra.mxu2 %v280_v1  ;;  %v278_v11 = vld [vmem:[%s1987_s1 + $0x160] sm:$0xff] }
   0xf   : > { %318 = vmatpush.msra.mxu1 %v265_v4  ;;  %359 = vmatpush.msra.mxu3 %v296_v6  ;;  %v263_v12 = vld [vmem:[%s1987_s1 + $0xe8] sm:$0xff]  ;;  %v294_v13 = vld [vmem:[%s1987_s1 + $0x1e0] sm:$0xff]  ;;  %v277_v16 = vld [vmem:[%s1987_s1 + $0x158] sm:$0xff] }
  0x10   : > { %299 = vmatpush.msra.mxu0 %v248_v7  ;;  %340 = vmatpush.msra.mxu2 %v279_v5  ;;  %v246_v14 = vld [vmem:[%s1987_s1 + $0x60] sm:$0xff]  ;;  %v293_v17 = vld [vmem:[%s1987_s1 + $0x1d8] sm:$0xff]  ;;  %v276_v20 = vld [vmem:[%s1987_s1 + $0x150] sm:$0xff] }
  0x11   : > { %319 = vmatpush.msra.mxu1 %v264_v8  ;;  %360 = vmatpush.msra.mxu3 %v295_v9  ;;  %v262_v15 = vld [vmem:[%s1987_s1 + $0xe0] sm:$0xff]  ;;  %v245_v18 = vld [vmem:[%s1987_s1 + $0x58] sm:$0xff]  ;;  %v292_v21 = vld [vmem:[%s1987_s1 + $0x1d0] sm:$0xff] }
  0x12   : > { %300 = vmatpush.msra.mxu0 %v247_v10  ;;  %341 = vmatpush.msra.mxu2 %v278_v11  ;;  %v261_v19 = vld [vmem:[%s1987_s1 + $0xd8] sm:$0xff]  ;;  %v244_v22 = vld [vmem:[%s1987_s1 + $0x50] sm:$0xff]  ;;  %v275_v24 = vld [vmem:[%s1987_s1 + $0x148] sm:$0xff] }
  0x13   : > { %320 = vmatpush.msra.mxu1 %v263_v12  ;;  %361 = vmatpush.msra.mxu3 %v294_v13  ;;  %v260_v23 = vld [vmem:[%s1987_s1 + $0xd0] sm:$0xff]  ;;  %v291_v25 = vld [vmem:[%s1987_s1 + $0x1c8] sm:$0xff]  ;;  %v274_v28 = vld [vmem:[%s1987_s1 + $0x140] sm:$0xff] }
  0x14   : > { %301 = vmatpush.msra.mxu0 %v246_v14  ;;  %342 = vmatpush.msra.mxu2 %v277_v16  ;;  %v243_v26 = vld [vmem:[%s1987_s1 + $0x48] sm:$0xff]  ;;  %v290_v29 = vld [vmem:[%s1987_s1 + $0x1c0] sm:$0xff]  ;;  %v273_v32 = vld [vmem:[%s1987_s1 + $0x138] sm:$0xff] }
  0x15   : > { %321 = vmatpush.msra.mxu1 %v262_v15  ;;  %362 = vmatpush.msra.mxu3 %v293_v17  ;;  %v259_v27 = vld [vmem:[%s1987_s1 + $0xc8] sm:$0xff]  ;;  %v242_v30 = vld [vmem:[%s1987_s1 + $0x40] sm:$0xff]  ;;  %v289_v33 = vld [vmem:[%s1987_s1 + $0x1b8] sm:$0xff] }
  0x16   : > { %302 = vmatpush.msra.mxu0 %v245_v18  ;;  %343 = vmatpush.msra.mxu2 %v276_v20  ;;  %v258_v31 = vld [vmem:[%s1987_s1 + $0xc0] sm:$0xff]  ;;  %v241_v34 = vld [vmem:[%s1987_s1 + $0x38] sm:$0xff]  ;;  %v272_v36 = vld [vmem:[%s1987_s1 + $0x130] sm:$0xff] }
  0x17   : > { %322 = vmatpush.msra.mxu1 %v261_v19  ;;  %363 = vmatpush.msra.mxu3 %v292_v21  ;;  %v257_v35 = vld [vmem:[%s1987_s1 + $0xb8] sm:$0xff]  ;;  %v288_v37 = vld [vmem:[%s1987_s1 + $0x1b0] sm:$0xff]  ;;  %v271_v38 = vld [vmem:[%s1987_s1 + $0x128] sm:$0xff] }
  0x18   : > { %303 = vmatpush.msra.mxu0 %v244_v22  ;;  %344 = vmatpush.msra.mxu2 %v275_v24  ;;  %v240_v39 = vld [vmem:[%s1987_s1 + $0x30] sm:$0xff]  ;;  %v270_v41 = vld [vmem:[%s1987_s1 + $0x120] sm:$0xff]  ;;  %v287_v42 = vld [vmem:[%s1987_s1 + $0x1a8] sm:$0xff] }
  0x19   : > { %323 = vmatpush.msra.mxu1 %v260_v23  ;;  %364 = vmatpush.msra.mxu3 %v291_v25  ;;  %v256_v40 = vld [vmem:[%s1987_s1 + $0xb0] sm:$0xff]  ;;  %v239_v43 = vld [vmem:[%s1987_s1 + $0x28] sm:$0xff]  ;;  %v286_v45 = vld [vmem:[%s1987_s1 + $0x1a0] sm:$0xff] }
  0x1a   : > { %304 = vmatpush.msra.mxu0 %v243_v26  ;;  %345 = vmatpush.msra.mxu2 %v274_v28  ;;  %v255_v44 = vld [vmem:[%s1987_s1 + $0xa8] sm:$0xff]  ;;  %v1591_v46 = vld [vmem:[%s1564_s25 + $0x10] sm:$0xff]  ;;  %v269_v47 = vld [vmem:[%s1987_s1 + $0x118] sm:$0xff] }
  0x1b   : > { %324 = vmatpush.msra.mxu1 %v259_v27  ;;  %365 = vmatpush.msra.mxu3 %v290_v29  ;;  %v238_v48 = vld [vmem:[%s1987_s1 + $0x20] sm:$0xff]  ;;  %v1603_v50 = vld [vmem:[%s1564_s25 + $0x30] sm:$0xff]  ;;  %v285_v51 = vld [vmem:[%s1987_s1 + $0x198] sm:$0xff] }
  0x1c   : > { %305 = vmatpush.msra.mxu0 %v242_v30  ;;  %346 = vmatpush.msra.mxu2 %v273_v32  ;;  %v254_v49 = vld [vmem:[%s1987_s1 + $0xa0] sm:$0xff]  ;;  %v220_v52 = vadd.f32 %v1603_v50, %v1591_v46  ;;  %v1611_v53 = vld [vmem:[%s1564_s25 + $0x18] sm:$0xff]  ;;  %v1631_v61 = vld [vmem:[%s1564_s25 + $0x8] sm:$0xff] }
  0x1d   : > { %325 = vmatpush.msra.mxu1 %v258_v31  ;;  %366 = vmatpush.msra.mxu3 %v289_v33  ;;  %v1614_v54 = vld [vmem:[%s1564_s25 + $0x38] sm:$0xff]  ;;  %v1625_v58 = vld [vmem:[%s1564_s25] sm:$0xff]  ;;  %v1634_v62 = vld [vmem:[%s1564_s25 + $0x28] sm:$0xff] }
  0x1e   : > { %306 = vmatpush.msra.mxu0 %v241_v34  ;;  %347 = vmatpush.msra.mxu2 %v272_v36  ;;  %v237_v55 = vld [vmem:[%s1987_s1 + $0x18] sm:$0xff]  ;;  %v227_v57 = vadd.f32 %v1614_v54, %v1611_v53  ;;  %v221_v59 = vrot.slane %v220_v52, 4  ;;  %v1628_v60 = vld [vmem:[%s1564_s25 + $0x20] sm:$0xff]  ;;  %v268_v63 = vld [vmem:[%s1987_s1 + $0x110] sm:$0xff]  ;;  %v213_v3 = vadd.f32 %v1634_v62, %v1631_v61 }
  0x1f   : > { %326 = vmatpush.msra.mxu1 %v257_v35  ;;  %367 = vmatpush.msra.mxu3 %v288_v37  ;;  %v253_v56 = vld [vmem:[%s1987_s1 + $0x98] sm:$0xff]  ;;  %v284_v0 = vld [vmem:[%s1987_s1 + $0x190] sm:$0xff]  ;;  %v206_v2 = vadd.f32 %v1628_v60, %v1625_v58  ;;  %v267_v7 = vld [vmem:[%s1987_s1 + $0x108] sm:$0xff] }
  0x20   : > { %307 = vmatpush.msra.mxu0 %v240_v39  ;;  %348 = vmatpush.msra.mxu2 %v271_v38  ;;  %v228_v1 = vrot.slane %v227_v57, 4  ;;  %v236_v4 = vld [vmem:[%s1987_s1 + $0x10] sm:$0xff]  ;;  %v222_v6 = vadd.f32 %v221_v59, %v220_v52  ;;  %v283_v8 = vld [vmem:[%s1987_s1 + $0x188] sm:$0xff]  ;;  %v214_v11 = vrot.slane %v213_v3, 4  ;;  %v266_v15 = vld [vmem:[%s1987_s1 + $0x100] sm:$0xff] }
  0x21   : > { %327 = vmatpush.msra.mxu1 %v256_v40  ;;  %368 = vmatpush.msra.mxu3 %v287_v42  ;;  %v252_v5 = vld [vmem:[%s1987_s1 + $0x90] sm:$0xff]  ;;  %v207_v10 = vrot.slane %v206_v2, 4  ;;  %v235_v13 = vld [vmem:[%s1987_s1 + $0x8] sm:$0xff]  ;;  %v282_v16 = vld [vmem:[%s1987_s1 + $0x180] sm:$0xff] }
  0x22   : > { %308 = vmatpush.msra.mxu0 %v239_v43  ;;  %349 = vmatpush.msra.mxu2 %v270_v41  ;;  %v229_v9 = vadd.f32 %v228_v1, %v227_v57  ;;  %v223_v12 = vrot.slane %v222_v6, 2  ;;  %v251_v14 = vld [vmem:[%s1987_s1 + $0x88] sm:$0xff]  ;;  %v215_v19 = vadd.f32 %v214_v11, %v213_v3  ;;  %v234_v21 = vld [vmem:[%s1987_s1] sm:$0xff]  ;;  %v419_v39 = vld [vmem:[%s1988_s2 + $0xb0] sm:$0x3] }
  0x23   : > { %328 = vmatpush.msra.mxu1 %v255_v44  ;;  %369 = vmatpush.msra.mxu3 %v286_v45  ;;  %v208_v18 = vadd.f32 %v207_v10, %v206_v2  ;;  %v250_v22 = vld [vmem:[%s1987_s1 + $0x80] sm:$0xff]  ;;  %v420_v40 = vld [vmem:[%s1988_s2 + $0xb8] sm:$0x3]  ;;  %v418_v43 = vld [vmem:[%s1988_s2 + $0xa8] sm:$0x3] }
  0x24   : > { %309 = vmatpush.msra.mxu0 %v238_v48  ;;  %350 = vmatpush.msra.mxu2 %v269_v47  ;;  %v230_v17 = vrot.slane %v229_v9, 2  ;;  %v224_v20 = vadd.f32 %v223_v12, %v222_v6  ;;  %v216_v25 = vrot.slane %v215_v19, 2  ;;  %v417_v42 = vld [vmem:[%s1988_s2 + $0xa0] sm:$0x3]  ;;  %v399_v47 = vld [vmem:[%s1988_s2 + $0x10] sm:$0xff]  ;;  %v400_v48 = vld [vmem:[%s1988_s2 + $0x18] sm:$0xff] }
  0x25   : > { %329 = vmatpush.msra.mxu1 %v254_v49  ;;  %370 = vmatpush.msra.mxu3 %v285_v51  ;;  %v209_v24 = vrot.slane %v208_v18, 2  ;;  %v397_v49 = vld [vmem:[%s1988_s2] sm:$0xff]  ;;  %v398_v51 = vld [vmem:[%s1988_s2 + $0x8] sm:$0xff]  ;;  %v403_v57 = vld [vmem:[%s1988_s2 + $0x30] sm:$0xff] }
  0x26   : > { %310 = vmatpush.msra.mxu0 %v237_v55  ;;  %351 = vmatpush.msra.mxu2 %v268_v63  ;;  %v231_v23 = vadd.f32 %v230_v17, %v229_v9  ;;  %v225_v26 = vrot.slane %v224_v20, 1  ;;  %v217_v29 = vadd.f32 %v216_v25, %v215_v19  ;;  %v423_v55 = vld [vmem:[%s1988_s2 + $0xd0] sm:$0x3]  ;;  %v404_v63 = vld [vmem:[%s1988_s2 + $0x38] sm:$0xff]  ;;  %v422_v1 = vld [vmem:[%s1988_s2 + $0xc8] sm:$0x3] }
  0x27   : > { %330 = vmatpush.msra.mxu1 %v253_v56  ;;  %371 = vmatpush.msra.mxu3 %v284_v0  ;;  %v210_v28 = vadd.f32 %v209_v24, %v208_v18  ;;  %v424_v56 = vld [vmem:[%s1988_s2 + $0xd8] sm:$0x3]  ;;  %v421_v0 = vld [vmem:[%s1988_s2 + $0xc0] sm:$0x3]  ;;  %v402_v3 = vld [vmem:[%s1988_s2 + $0x28] sm:$0xff] }
  0x28   : > { %311 = vmatpush.msra.mxu0 %v236_v4  ;;  %352 = vmatpush.msra.mxu2 %v267_v7  ;;  %v232_v27 = vrot.slane %v231_v23, 1  ;;  %v226_v30 = vadd.f32 %v225_v26, %v224_v20  ;;  %v218_v33 = vrot.slane %v217_v29, 1  ;;  %v401_v2 = vld [vmem:[%s1988_s2 + $0x20] sm:$0xff]  ;;  %v427_v17 = vld [vmem:[%s1988_s2 + $0xf0] sm:$0x3]  ;;  %v406_v24 = vld [vmem:[%s1988_s2 + $0x48] sm:$0xff] }
  0x29   : > { %331 = vmatpush.msra.mxu1 %v252_v5  ;;  %372 = vmatpush.msra.mxu3 %v283_v8  ;;  %v211_v32 = vrot.slane %v210_v28, 1  ;;  %v428_v18 = vld [vmem:[%s1988_s2 + $0xf8] sm:$0x3]  ;;  %v425_v19 = vld [vmem:[%s1988_s2 + $0xe0] sm:$0x3] }
  0x2a   : > { %312 = vmatpush.msra.mxu0 %v235_v13  ;;  %353 = vmatpush.msra.mxu2 %v266_v15  ;;  %v233_v31 = vadd.f32 %v232_v27, %v231_v23  ;;  %v219_v35 = vadd.f32 %v218_v33, %v217_v29  ;;  %v426_v20 = vld [vmem:[%s1988_s2 + $0xe8] sm:$0x3]  ;;  %v405_v23 = vld [vmem:[%s1988_s2 + $0x40] sm:$0xff]  ;;  %v431_v25 = vld [vmem:[%s1988_s2 + $0x110] sm:$0x3] }
  0x2b   : > { %332 = vmatpush.msra.mxu1 %v251_v14  ;;  %373 = vmatpush.msra.mxu3 %v282_v16  ;;  %v212_v34 = vadd.f32 %v211_v32, %v210_v28  ;;  %v432_v26 = vld [vmem:[%s1988_s2 + $0x118] sm:$0x3]  ;;  %v429_v27 = vld [vmem:[%s1988_s2 + $0x100] sm:$0x3]  ;;  %v430_v28 = vld [vmem:[%s1988_s2 + $0x108] sm:$0x3] }
  0x2c   : > { %313 = vmatpush.msra.mxu0 %v234_v21  ;;  %354 = vmatmul.f32.vlgmr.msra.gmra.mxu2 %v226_v30  ;;  %v407_v21 = vld [vmem:[%s1988_s2 + $0x50] sm:$0xff]  ;;  %v412_v30 = vld [vmem:[%s1988_s2 + $0x78] sm:$0xff]  ;;  %v410_v32 = vld [vmem:[%s1988_s2 + $0x68] sm:$0xff] }
  0x2d   : > { %333 = vmatpush.msra.mxu1 %v250_v22  ;;  %374 = vmatmul.f32.vlgmr.msra.gmra.mxu3 %v233_v31  ;;  %v408_v22 = vld [vmem:[%s1988_s2 + $0x58] sm:$0xff]  ;;  %v411_v29 = vld [vmem:[%s1988_s2 + $0x70] sm:$0xff]  ;;  %v409_v31 = vld [vmem:[%s1988_s2 + $0x60] sm:$0xff] }
  0x2e   : > { %314 = vmatmul.f32.vlgmr.msra.gmra.mxu0 %v212_v34  ;;  %334 = vmatmul.f32.vlgmr.msra.gmra.mxu1 %v219_v35  ;;  %v435_v33 = vld [vmem:[%s1988_s2 + $0x130] sm:$0x3]  ;;  %v436_v34 = vld [vmem:[%s1988_s2 + $0x138] sm:$0x3]  ;;  %v433_v35 = vld [vmem:[%s1988_s2 + $0x120] sm:$0x3] }
  0x2f   : > { %1299 = vmatpush.msk.msrb.mxu2 %vm441_vm0, %v419_v39  ;;  %1301 = vmatpush.msk.msrb.mxu3 %vm441_vm0, %v420_v40  ;;  %v413_v39 = vld [vmem:[%s1988_s2 + $0x80] sm:$0xff]  ;;  %v414_v40 = vld [vmem:[%s1988_s2 + $0x88] sm:$0xff] }
  0x30   : > { %1295 = vmatpush.msk.msrb.mxu0 %vm441_vm0, %v417_v42  ;;  %1297 = vmatpush.msk.msrb.mxu1 %vm441_vm0, %v418_v43  ;;  %v911_v42 = vld [vmem:[%s1989_s3 + $0x48] sm:$0xff] }
  0x31   : > { %557 = vmatpush.msrb.mxu2 %v399_v47  ;;  %577 = vmatpush.msrb.mxu3 %v400_v48 }
  0x32   : > { %517 = vmatpush.msrb.mxu0 %v397_v49  ;;  %537 = vmatpush.msrb.mxu1 %v398_v51 }
  0x33   : > { %1307 = vmatpush.msk.msra.mxu2 %vm441_vm0, %v423_v55  ;;  %1309 = vmatpush.msk.msra.mxu3 %vm441_vm0, %v424_v56 }
  0x34   : > { %1303 = vmatpush.msk.msra.mxu0 %vm441_vm0, %v421_v0  ;;  %1305 = vmatpush.msk.msra.mxu1 %vm441_vm0, %v422_v1 }
  0x35   : > { %637 = vmatpush.msra.mxu2 %v403_v57  ;;  %657 = vmatpush.msra.mxu3 %v404_v63 }
  0x36   : > { %597 = vmatpush.msra.mxu0 %v401_v2  ;;  %617 = vmatpush.msra.mxu1 %v402_v3 }
  0xab   : > { %v315_v36 = vpop.f32.mrf.mxu0  ;;  %v335_v37 = vpop.f32.mrf.mxu1 }
  0xac   : > { %v336_v38 = vadd.f32 %v335_v37, %v315_v36  ;;  %v434_v36 = vld [vmem:[%s1988_s2 + $0x128] sm:$0x3]  ;;  %v415_v37 = vld [vmem:[%s1988_s2 + $0x90] sm:$0xff] }
  0xaf   : > { %v355_v41 = vpop.f32.mrf.mxu2 }
  0xb0   : > { %v356_v44 = vadd.f32 %v355_v41, %v336_v38  ;;  %v375_v45 = vpop.f32.mrf.mxu3  ;;  %v416_v38 = vld [vmem:[%s1988_s2 + $0x98] sm:$0xff]  ;;  %v910_v41 = vld [vmem:[%s1989_s3 + $0x40] sm:$0xff] }
  0xb2   : > { %v376_v52 = vadd.f32 %v375_v45, %v356_v44 }
  0xb4   : > { %v378_v59 = vsub.f32 0.0, %v376_v52 }
  0xb6   : > { %v379_v4 = vmul.f32 1.442695, %v378_v59 }
  0xb8   : > { %1387 = vpow2.f32 %v379_v4 }
  0xbe   : > { %v1388_v5 = vpop.eup %1387 }
  0xbf   : > { %v381_v6 = vadd.f32 1.0, %v1388_v5 }
  0xc1   : > { %1389 = vrcp.f32 %v381_v6  ;;  %v393_v10 = vand.u32 2147483648, %v381_v6  ;;  %v391_v12 = vand.u32 2147483647, %v381_v6  ;;  %vm387_vm2 = vweird.f32 %v381_v6 }
  0xc3   : > { %v394_v14 = vor.u32 1.1754944e-38, %v393_v10  ;;  %vm392_vm5 = vcmp.eq.f32.partialorder %v391_v12, 8.507059e+37 }
  0xc7   : > { %v1390_v7 = vpop.eup %1389 }
  0xc8   : > { %v383_v8 = vmul.f32 %v1390_v7, %v381_v6  ;;  %vm388_vm1 = vweird.f32 %v1390_v7 }
  0xc9   : > { %vm389_vm3 = vmor %vm387_vm2, %vm388_vm1 }
  0xca   : > { %v384_v9 = vsub.f32 1.0, %v383_v8 }
  0xcc   : > { %v385_v11 = vmul.f32 %v1390_v7, %v384_v9 }
  0xce   : > { %v386_v13 = vadd.f32 %v1390_v7, %v385_v11 }
  0xd0   : > { %v390_v15 = vsel %vm389_vm3, %v1390_v7, %v386_v13 }
  0xd1   : > { %v1732_v16 = vsel %vm392_vm5, %v394_v14, %v390_v15 }
  0xd2   : > { %1296 = vmatmul.msk.f32.vlgmr.msrb.gmra.mxu0 %vm437_vm4, %v1732_v16  ;;  %1298 = vmatmul.msk.f32.vlgmr.msrb.gmra.mxu1 %vm437_vm4, %v1732_v16 }
  0xd3   : > { %1300 = vmatmul.msk.f32.vlgmr.msrb.gmra.mxu2 %vm437_vm4, %v1732_v16  ;;  %1302 = vmatmul.msk.f32.vlgmr.msrb.gmra.mxu3 %vm437_vm4, %v1732_v16 }
  0xd4   : > { %1315 = vmatpush.msk.msrb.mxu2 %vm441_vm0, %v427_v17  ;;  %1317 = vmatpush.msk.msrb.mxu3 %vm441_vm0, %v428_v18 }
  0xd5   : > { %1311 = vmatpush.msk.msrb.mxu0 %vm441_vm0, %v425_v19  ;;  %1313 = vmatpush.msk.msrb.mxu1 %vm441_vm0, %v426_v20 }
  0xd6   : > { %717 = vmatpush.msrb.mxu2 %v407_v21  ;;  %737 = vmatpush.msrb.mxu3 %v408_v22 }
  0xd7   : > { %677 = vmatpush.msrb.mxu0 %v405_v23  ;;  %697 = vmatpush.msrb.mxu1 %v406_v24 }
  0xda   : > { %1304 = vmatmul.msk.f32.vlgmr.msra.gmra.mxu0 %vm437_vm4, %v1732_v16  ;;  %1306 = vmatmul.msk.f32.vlgmr.msra.gmra.mxu1 %vm437_vm4, %v1732_v16 }
  0xdb   : > { %1308 = vmatmul.msk.f32.vlgmr.msra.gmra.mxu2 %vm437_vm4, %v1732_v16  ;;  %1310 = vmatmul.msk.f32.vlgmr.msra.gmra.mxu3 %vm437_vm4, %v1732_v16 }
  0xdc   : > { %1323 = vmatpush.msk.msra.mxu2 %vm441_vm0, %v431_v25  ;;  %1325 = vmatpush.msk.msra.mxu3 %vm441_vm0, %v432_v26 }
  0xdd   : > { %1319 = vmatpush.msk.msra.mxu0 %vm441_vm0, %v429_v27  ;;  %1321 = vmatpush.msk.msra.mxu1 %vm441_vm0, %v430_v28 }
  0xde   : > { %797 = vmatpush.msra.mxu2 %v411_v29  ;;  %817 = vmatpush.msra.mxu3 %v412_v30 }
  0xdf   : > { %757 = vmatpush.msra.mxu0 %v409_v31  ;;  %777 = vmatpush.msra.mxu1 %v410_v32 }
  0xe2   : > { %1312 = vmatmul.msk.f32.vlgmr.msrb.gmra.mxu0 %vm437_vm4, %v1732_v16  ;;  %1314 = vmatmul.msk.f32.vlgmr.msrb.gmra.mxu1 %vm437_vm4, %v1732_v16 }
  0xe3   : > { %1316 = vmatmul.msk.f32.vlgmr.msrb.gmra.mxu2 %vm437_vm4, %v1732_v16  ;;  %1318 = vmatmul.msk.f32.vlgmr.msrb.gmra.mxu3 %vm437_vm4, %v1732_v16 }
  0xe4   : > { %1331 = vmatpush.msk.msrb.mxu2 %vm441_vm0, %v435_v33  ;;  %1333 = vmatpush.msk.msrb.mxu3 %vm441_vm0, %v436_v34 }
  0xe5   : > { %1327 = vmatpush.msk.msrb.mxu0 %vm441_vm0, %v433_v35  ;;  %1329 = vmatpush.msk.msrb.mxu1 %vm441_vm0, %v434_v36 }
  0xe6   : > { %877 = vmatpush.msrb.mxu2 %v415_v37  ;;  %897 = vmatpush.msrb.mxu3 %v416_v38 }
  0xe7   : > { %837 = vmatpush.msrb.mxu0 %v413_v39  ;;  %857 = vmatpush.msrb.mxu1 %v414_v40 }
  0xea   : > { %1320 = vmatmul.msk.f32.vlgmr.msra.gmra.mxu0 %vm437_vm4, %v1732_v16  ;;  %1322 = vmatmul.msk.f32.vlgmr.msra.gmra.mxu1 %vm437_vm4, %v1732_v16 }
  0xeb   : > { %1324 = vmatmul.msk.f32.vlgmr.msra.gmra.mxu2 %vm437_vm4, %v1732_v16  ;;  %1326 = vmatmul.msk.f32.vlgmr.msra.gmra.mxu3 %vm437_vm4, %v1732_v16 }
  0xec   : > { %1051 = vmatpush.msra.mxu2 %v1603_v50  ;;  %1098 = vmatpush.msra.mxu3 %v1614_v54  ;;  %v903_v50 = vld [vmem:[%s1989_s3 + $0x8] sm:$0xff]  ;;  %v905_v54 = vld [vmem:[%s1989_s3 + $0x18] sm:$0xff] }
  0xed   : > { %957 = vmatpush.msra.mxu0 %v1628_v60  ;;  %1004 = vmatpush.msra.mxu1 %v1634_v62  ;;  %v907_v60 = vld [vmem:[%s1989_s3 + $0x28] sm:$0xff]  ;;  %v909_v62 = vld [vmem:[%s1989_s3 + $0x38] sm:$0xff] }
  0xee   : > { %1052 = vmatpush.msra.mxu2 %v1591_v46  ;;  %1099 = vmatpush.msra.mxu3 %v1611_v53  ;;  %v902_v46 = vld [vmem:[%s1989_s3] sm:$0xff]  ;;  %v904_v53 = vld [vmem:[%s1989_s3 + $0x10] sm:$0xff] }
  0xef   : > { %958 = vmatpush.msra.mxu0 %v1625_v58  ;;  %1005 = vmatpush.msra.mxu1 %v1631_v61  ;;  %v906_v58 = vld [vmem:[%s1989_s3 + $0x20] sm:$0xff]  ;;  %v908_v61 = vld [vmem:[%s1989_s3 + $0x30] sm:$0xff] }
  0xf2   : > { %1328 = vmatmul.msk.f32.vlgmr.msrb.gmra.mxu0 %vm437_vm4, %v1732_v16  ;;  %1330 = vmatmul.msk.f32.vlgmr.msrb.gmra.mxu1 %vm437_vm4, %v1732_v16 }
  0xf3   : > { %1332 = vmatmul.msk.f32.vlgmr.msrb.gmra.mxu2 %vm437_vm4, %v1732_v16  ;;  %1334 = vmatmul.msk.f32.vlgmr.msrb.gmra.mxu3 %vm437_vm4, %v1732_v16 }
  0xfa   : > { %1335 = vmatmul.msk.f32.vlgmr.msra.gmra.mxu0 %vm912_vm6, %v902_v46  ;;  %1345 = vmatmul.msk.f32.vlgmr.msra.gmra.mxu1 %vm912_vm6, %v902_v46 }
  0xfb   : > { %1355 = vmatmul.msk.f32.vlgmr.msra.gmra.mxu2 %vm912_vm6, %v902_v46  ;;  %1365 = vmatmul.msk.f32.vlgmr.msra.gmra.mxu3 %vm912_vm6, %v902_v46 }
 0x102   : > { %1336 = vmatmul.msk.f32.gmra.mxu0 %vm912_vm6, %v903_v50  ;;  %1346 = vmatmul.msk.f32.gmra.mxu1 %vm912_vm6, %v903_v50 }
 0x103   : > { %1356 = vmatmul.msk.f32.gmra.mxu2 %vm912_vm6, %v903_v50  ;;  %1366 = vmatmul.msk.f32.gmra.mxu3 %vm912_vm6, %v903_v50 }
 0x10a   : > { %1337 = vmatmul.msk.f32.gmra.mxu0 %vm912_vm6, %v904_v53  ;;  %1347 = vmatmul.msk.f32.gmra.mxu1 %vm912_vm6, %v904_v53 }
 0x10b   : > { %1357 = vmatmul.msk.f32.gmra.mxu2 %vm912_vm6, %v904_v53  ;;  %1367 = vmatmul.msk.f32.gmra.mxu3 %vm912_vm6, %v904_v53 }
 0x112   : > { %1338 = vmatmul.msk.f32.gmra.mxu0 %vm912_vm6, %v905_v54  ;;  %1348 = vmatmul.msk.f32.gmra.mxu1 %vm912_vm6, %v905_v54 }
 0x113   : > { %1358 = vmatmul.msk.f32.gmra.mxu2 %vm912_vm6, %v905_v54  ;;  %1368 = vmatmul.msk.f32.gmra.mxu3 %vm912_vm6, %v905_v54 }
 0x11a   : > { %1339 = vmatmul.msk.f32.gmra.mxu0 %vm912_vm6, %v906_v58  ;;  %1349 = vmatmul.msk.f32.gmra.mxu1 %vm912_vm6, %v906_v58 }
 0x11b   : > { %1359 = vmatmul.msk.f32.gmra.mxu2 %vm912_vm6, %v906_v58  ;;  %1369 = vmatmul.msk.f32.gmra.mxu3 %vm912_vm6, %v906_v58 }
 0x122   : > { %1340 = vmatmul.msk.f32.gmra.mxu0 %vm912_vm6, %v907_v60  ;;  %1350 = vmatmul.msk.f32.gmra.mxu1 %vm912_vm6, %v907_v60 }
 0x123   : > { %1360 = vmatmul.msk.f32.gmra.mxu2 %vm912_vm6, %v907_v60  ;;  %1370 = vmatmul.msk.f32.gmra.mxu3 %vm912_vm6, %v907_v60 }
 0x12a   : > { %1341 = vmatmul.msk.f32.gmra.mxu0 %vm912_vm6, %v908_v61  ;;  %1351 = vmatmul.msk.f32.gmra.mxu1 %vm912_vm6, %v908_v61 }
 0x12b   : > { %1361 = vmatmul.msk.f32.gmra.mxu2 %vm912_vm6, %v908_v61  ;;  %1371 = vmatmul.msk.f32.gmra.mxu3 %vm912_vm6, %v908_v61 }
 0x132   : > { %1342 = vmatmul.msk.f32.gmra.mxu0 %vm912_vm6, %v909_v62  ;;  %1352 = vmatmul.msk.f32.gmra.mxu1 %vm912_vm6, %v909_v62 }
 0x133   : > { %1362 = vmatmul.msk.f32.gmra.mxu2 %vm912_vm6, %v909_v62  ;;  %1372 = vmatmul.msk.f32.gmra.mxu3 %vm912_vm6, %v909_v62 }
 0x13a   : > { %1343 = vmatmul.msk.f32.gmra.mxu0 %vm912_vm6, %v910_v41  ;;  %1353 = vmatmul.msk.f32.gmra.mxu1 %vm912_vm6, %v910_v41 }
 0x13b   : > { %1363 = vmatmul.msk.f32.gmra.mxu2 %vm912_vm6, %v910_v41  ;;  %1373 = vmatmul.msk.f32.gmra.mxu3 %vm912_vm6, %v910_v41 }
 0x142   : > { %1344 = vmatmul.msk.f32.gmra.mxu0 %vm912_vm6, %v911_v42  ;;  %1354 = vmatmul.msk.f32.gmra.mxu1 %vm912_vm6, %v911_v42 }
 0x143   : > { %1364 = vmatmul.msk.f32.gmra.mxu2 %vm912_vm6, %v911_v42  ;;  %1374 = vmatmul.msk.f32.gmra.mxu3 %vm912_vm6, %v911_v42 }
 0x14f   : > { %v519_v43 = vpop.f32.mrf.mxu0  ;;  %v539_v44 = vpop.f32.mrf.mxu1 }
 0x150   : > { %v1131_v13 = vperm.slane %v519_v43, 0  ;;  %v1132_v14 = vperm.slane %v539_v44, 0 }
 0x156   : > { %v1936_v45 = vpop.f32.mrf.mxu2  ;;  %v1938_v47 = vpop.f32.mrf.mxu3 }
 0x157   : > { %v599_v48 = vpop.f32.mrf.mxu0  ;;  %v619_v49 = vpop.f32.mrf.mxu1  ;;  %v1133_v27 = vperm.slane %v1936_v45, 0  ;;  %v1134_v28 = vperm.slane %v1938_v47, 0 }
 0x158   : > { %v1143_v15 = vperm.slane %v599_v48, 0  ;;  %v1144_v16 = vperm.slane %v619_v49, 0 }
 0x15e   : > { %v639_v51 = vpop.f32.mrf.mxu2  ;;  %v659_v52 = vpop.f32.mrf.mxu3 }
 0x15f   : > { %v1940_v55 = vpop.f32.mrf.mxu0  ;;  %v1942_v56 = vpop.f32.mrf.mxu1  ;;  %v1145_v29 = vperm.slane %v639_v51, 0  ;;  %v1146_v30 = vperm.slane %v659_v52, 0 }
 0x160   : > { %v1163_v61 = vperm.slane %v1940_v55, 0  ;;  %v1164_v62 = vperm.slane %v1942_v56, 0 }
 0x166   : > { %v1944_v57 = vpop.f32.mrf.mxu2  ;;  %v1946_v59 = vpop.f32.mrf.mxu3 }
 0x167   : > { %v1948_v63 = vpop.f32.mrf.mxu0  ;;  %v1950_v0 = vpop.f32.mrf.mxu1  ;;  %v1166_v55 = vperm.slane %v1946_v59, 0 }
 0x16e   : > { %v1952_v1 = vpop.f32.mrf.mxu2  ;;  %v1954_v2 = vpop.f32.mrf.mxu3 }
 0x16f   : > { %v1956_v3 = vpop.f32.mrf.mxu0  ;;  %v1958_v4 = vpop.f32.mrf.mxu1 }
 0x176   : > { %v1960_v5 = vpop.f32.mrf.mxu2  ;;  %v1962_v6 = vpop.f32.mrf.mxu3 }
 0x177   : > { %v960_v7 = vpop.f32.mrf.mxu0  ;;  %v1007_v8 = vpop.f32.mrf.mxu1 }
 0x178   : > { %v1135_v21 = vmul.f32 %v1131_v13, %v960_v7  ;;  %v1136_v22 = vmul.f32 %v1132_v14, %v1007_v8 }
 0x17e   : > { %v1054_v9 = vpop.f32.mrf.mxu2  ;;  %v1101_v10 = vpop.f32.mrf.mxu3 }
 0x17f   : > { %v963_v11 = vpop.f32.mrf.mxu0  ;;  %v1010_v12 = vpop.f32.mrf.mxu1  ;;  %v1137_v33 = vmul.f32 %v1133_v27, %v1054_v9  ;;  %v1138_v34 = vmul.f32 %v1134_v28, %v1101_v10 }
 0x180   : > { %v1139_v39 = vmul.f32 %v1131_v13, %v963_v11  ;;  %v1140_v40 = vmul.f32 %v1132_v14, %v1010_v12  ;;  %v1165_v11 = vperm.slane %v1944_v57, 0 }
 0x186   : > { %v1057_v17 = vpop.f32.mrf.mxu2  ;;  %v1104_v18 = vpop.f32.mrf.mxu3 }
 0x187   : > { %v966_v19 = vpop.f32.mrf.mxu0  ;;  %v1013_v20 = vpop.f32.mrf.mxu1  ;;  %v1141_v43 = vmul.f32 %v1133_v27, %v1057_v17  ;;  %v1142_v44 = vmul.f32 %v1134_v28, %v1104_v18 }
 0x188   : > { %v1147_v23 = vmul.f32 %v1143_v15, %v966_v19  ;;  %v1148_v24 = vmul.f32 %v1144_v16, %v1013_v20 }
 0x18a   : > { %v1155_v25 = vadd.f32 %v1147_v23, %v1135_v21  ;;  %v1156_v26 = vadd.f32 %v1148_v24, %v1136_v22  ;;  %v1183_v23 = vperm.slane %v1948_v63, 0  ;;  %v1184_v24 = vperm.slane %v1950_v0, 0 }
 0x18e   : > { %v1060_v31 = vpop.f32.mrf.mxu2  ;;  %v1107_v32 = vpop.f32.mrf.mxu3 }
 0x18f   : > { %v1149_v35 = vmul.f32 %v1145_v29, %v1060_v31  ;;  %v1150_v36 = vmul.f32 %v1146_v30, %v1107_v32  ;;  %v969_v37 = vpop.f32.mrf.mxu0  ;;  %v1016_v38 = vpop.f32.mrf.mxu1 }
 0x190   : > { %v1151_v46 = vmul.f32 %v1143_v15, %v969_v37  ;;  %v1152_v50 = vmul.f32 %v1144_v16, %v1016_v38 }
 0x191   : > { %v1157_v53 = vadd.f32 %v1149_v35, %v1137_v33  ;;  %v1158_v54 = vadd.f32 %v1150_v36, %v1138_v34  ;;  %v1185_v35 = vperm.slane %v1952_v1, 0  ;;  %v1186_v36 = vperm.slane %v1954_v2, 0 }
 0x192   : > { %v1159_v58 = vadd.f32 %v1151_v46, %v1139_v39  ;;  %v1160_v60 = vadd.f32 %v1152_v50, %v1140_v40 }
 0x196   : > { %v1063_v41 = vpop.f32.mrf.mxu2  ;;  %v1110_v42 = vpop.f32.mrf.mxu3 }
 0x197   : > { %v1153_v45 = vmul.f32 %v1145_v29, %v1063_v41  ;;  %v1154_v47 = vmul.f32 %v1146_v30, %v1110_v42  ;;  %v972_v48 = vpop.f32.mrf.mxu0  ;;  %v1019_v49 = vpop.f32.mrf.mxu1 }
 0x198   : > { %v1167_v51 = vmul.f32 %v1163_v61, %v972_v48  ;;  %v1168_v52 = vmul.f32 %v1164_v62, %v1019_v49 }
 0x199   : > { %v1161_v7 = vadd.f32 %v1153_v45, %v1141_v43  ;;  %v1162_v8 = vadd.f32 %v1154_v47, %v1142_v44 }
 0x19a   : > { %v1175_v9 = vadd.f32 %v1167_v51, %v1155_v25  ;;  %v1176_v10 = vadd.f32 %v1168_v52, %v1156_v26 }
 0x19e   : > { %v1066_v12 = vpop.f32.mrf.mxu2  ;;  %v1113_v56 = vpop.f32.mrf.mxu3 }
 0x19f   : > { %v1169_v13 = vmul.f32 %v1165_v11, %v1066_v12  ;;  %v1170_v14 = vmul.f32 %v1166_v55, %v1113_v56  ;;  %v975_v15 = vpop.f32.mrf.mxu0  ;;  %v1022_v16 = vpop.f32.mrf.mxu1 }
 0x1a0   : > { %v1171_v17 = vmul.f32 %v1163_v61, %v975_v15  ;;  %v1172_v18 = vmul.f32 %v1164_v62, %v1022_v16  ;;  %v1203_v61 = vperm.slane %v1956_v3, 0  ;;  %v1204_v62 = vperm.slane %v1958_v4, 0 }
 0x1a1   : > { %v1177_v19 = vadd.f32 %v1169_v13, %v1157_v53  ;;  %v1178_v20 = vadd.f32 %v1170_v14, %v1158_v54  ;;  %v1205_v3 = vperm.slane %v1960_v5, 0  ;;  %v1206_v4 = vperm.slane %v1962_v6, 0 }
 0x1a2   : > { %v1179_v21 = vadd.f32 %v1171_v17, %v1159_v58  ;;  %v1180_v22 = vadd.f32 %v1172_v18, %v1160_v60 }
 0x1a6   : > { %v1069_v25 = vpop.f32.mrf.mxu2  ;;  %v1116_v57 = vpop.f32.mrf.mxu3 }
 0x1a7   : > { %v1173_v26 = vmul.f32 %v1165_v11, %v1069_v25  ;;  %v1174_v59 = vmul.f32 %v1166_v55, %v1116_v57  ;;  %v978_v27 = vpop.f32.mrf.mxu0  ;;  %v1025_v28 = vpop.f32.mrf.mxu1 }
 0x1a8   : > { %v1187_v29 = vmul.f32 %v1183_v23, %v978_v27  ;;  %v1188_v30 = vmul.f32 %v1184_v24, %v1025_v28 }
 0x1a9   : > { %v1181_v31 = vadd.f32 %v1173_v26, %v1161_v7  ;;  %v1182_v32 = vadd.f32 %v1174_v59, %v1162_v8 }
 0x1aa   : > { %v1195_v33 = vadd.f32 %v1187_v29, %v1175_v9  ;;  %v1196_v34 = vadd.f32 %v1188_v30, %v1176_v10 }
 0x1ae   : > { %v1072_v37 = vpop.f32.mrf.mxu2  ;;  %v1119_v63 = vpop.f32.mrf.mxu3 }
 0x1af   : > { %v1189_v38 = vmul.f32 %v1185_v35, %v1072_v37  ;;  %v1190_v0 = vmul.f32 %v1186_v36, %v1119_v63  ;;  %v981_v39 = vpop.f32.mrf.mxu0  ;;  %v1028_v40 = vpop.f32.mrf.mxu1 }
 0x1b0   : > { %v1191_v46 = vmul.f32 %v1183_v23, %v981_v39  ;;  %v1192_v50 = vmul.f32 %v1184_v24, %v1028_v40 }
 0x1b1   : > { %v1197_v53 = vadd.f32 %v1189_v38, %v1177_v19  ;;  %v1198_v54 = vadd.f32 %v1190_v0, %v1178_v20 }
 0x1b2   : > { %v1199_v58 = vadd.f32 %v1191_v46, %v1179_v21  ;;  %v1200_v60 = vadd.f32 %v1192_v50, %v1180_v22 }
 0x1b6   : > { %v1075_v1 = vpop.f32.mrf.mxu2  ;;  %v1122_v41 = vpop.f32.mrf.mxu3 }
 0x1b7   : > { %v1193_v2 = vmul.f32 %v1185_v35, %v1075_v1  ;;  %v1194_v42 = vmul.f32 %v1186_v36, %v1122_v41  ;;  %v984_v43 = vpop.f32.mrf.mxu0  ;;  %v1031_v44 = vpop.f32.mrf.mxu1 }
 0x1b8   : > { %v1207_v45 = vmul.f32 %v1203_v61, %v984_v43  ;;  %v1208_v47 = vmul.f32 %v1204_v62, %v1031_v44 }
 0x1b9   : > { %v1201_v48 = vadd.f32 %v1193_v2, %v1181_v31  ;;  %v1202_v49 = vadd.f32 %v1194_v42, %v1182_v32 }
 0x1ba   : > { %v1215_v51 = vadd.f32 %v1207_v45, %v1195_v33  ;;  %v1216_v52 = vadd.f32 %v1208_v47, %v1196_v34 }
 0x1bc   : > { %1223 = vst [vmem:[%s197_s19] sm:$0xff] %v1215_v51 }
 0x1bd   : > { %1224 = vst [vmem:[%s197_s19 + $0x8] sm:$0xff] %v1216_v52 }
 0x1be   : > { %v1078_v7 = vpop.f32.mrf.mxu2  ;;  %v1125_v8 = vpop.f32.mrf.mxu3 }
 0x1bf   : > { %v1209_v9 = vmul.f32 %v1205_v3, %v1078_v7  ;;  %v1210_v10 = vmul.f32 %v1206_v4, %v1125_v8  ;;  %v987_v11 = vpop.f32.mrf.mxu0  ;;  %v1034_v55 = vpop.f32.mrf.mxu1 }
 0x1c0   : > { %v1211_v12 = vmul.f32 %v1203_v61, %v987_v11  ;;  %v1212_v56 = vmul.f32 %v1204_v62, %v1034_v55 }
 0x1c1   : > { %v1217_v13 = vadd.f32 %v1209_v9, %v1197_v53  ;;  %v1218_v14 = vadd.f32 %v1210_v10, %v1198_v54 }
 0x1c2   : > { %v1219_v15 = vadd.f32 %v1211_v12, %v1199_v58  ;;  %v1220_v16 = vadd.f32 %v1212_v56, %v1200_v60 }
 0x1c3   : > { %1225 = vst [vmem:[%s197_s19 + $0x10] sm:$0xff] %v1217_v13 }
 0x1c4   : > { %1226 = vst [vmem:[%s197_s19 + $0x18] sm:$0xff] %v1218_v14 }
 0x1c5   : > { %1227 = vst [vmem:[%s197_s19 + $0x20] sm:$0xff] %v1219_v15 }
 0x1c6   : > { %1228 = vst [vmem:[%s197_s19 + $0x28] sm:$0xff] %v1220_v16  ;;  %v1081_v5 = vpop.f32.mrf.mxu2  ;;  %v1128_v17 = vpop.f32.mrf.mxu3 }
 0x1c7   : > { %v1213_v6 = vmul.f32 %v1205_v3, %v1081_v5  ;;  %v1214_v18 = vmul.f32 %v1206_v4, %v1128_v17 }
 0x1c9   : > { %v1221_v19 = vadd.f32 %v1213_v6, %v1201_v48  ;;  %v1222_v20 = vadd.f32 %v1214_v18, %v1202_v49 }
 0x1cb   : > { %1229 = vst [vmem:[%s197_s19 + $0x30] sm:$0xff] %v1221_v19 }
 0x1cc   : > { %1230 = vst [vmem:[%s197_s19 + $0x38] sm:$0xff] %v1222_v20 }
 0x1cd PF: > { %s14_s15 = sadd.s32 1, %s1397_s15  }
 0x1ce   : > { %p11_p4 = scmp.ge.s32.totalorder %s14_s15, 4  }
 0x1d0   :  { %13 = sbr.rel (!%p11_p4) target bundleno = 1 (0x1), region = 66 }

</bundles_post_ra>
